<compile_context>
chip_gen: v6e
topology: v6e:2x2x1
jax: 0.10.0
libtpu: 0.0.40
codegen_flags: <defaults>
</compile_context>

<pallas_src>
import functools

import jax
import jax.numpy as jnp
from jax.experimental import pallas as pl
from jax.experimental.pallas import tpu as pltpu


def gcn4_fused_kernel(x_ref, adj_ref, w1_ref, w2_hbm, w3_hbm, w4_ref, bias_ref,
                      out_ref, w2_vmem, w3_vmem, dma_sem):
    # Kick off the W2/W3 HBM->VMEM prefetches first so they overlap layer-1.
    w2_cp = pltpu.make_async_copy(w2_hbm, w2_vmem, dma_sem.at[0])
    w3_cp = pltpu.make_async_copy(w3_hbm, w3_vmem, dma_sem.at[1])
    w2_cp.start()
    w3_cp.start()

    d1 = w1_ref.shape[1]     # 512
    d2 = w2_vmem.shape[1]    # 256
    d3 = w3_vmem.shape[1]    # 128
    d4 = w4_ref.shape[1]     # 128 (NHID zero-padded to a full lane tile)

    adj = adj_ref[...]                              # (N, N) bf16 — reused 4x
    x_bf = x_ref[...].astype(jnp.bfloat16)          # in-kernel cast (free)

    # ---- layer 1:  (adj @ x) @ W1 + b1, ReLU ---------------------------------
    # Reassociated: Fin=32 << Fout=512, so contract adj with the narrow feature
    # dim first (N^2*32 instead of N^2*512 MXU flops for the adj matmul).
    ax = jnp.dot(adj, x_bf, preferred_element_type=jnp.float32)
    h = jnp.dot(ax.astype(jnp.bfloat16), w1_ref[...],
                preferred_element_type=jnp.float32)
    h = jnp.maximum(h + bias_ref[0:1, 0:d1], 0.0)

    # TODO(synk): F.dropout between layers is identity in eval mode; training-
    # mode dropout (pltpu.prng_random_bits mask) is not implemented here.

    # ---- layer 2:  adj @ (h @ W2) + b2, ReLU ---------------------------------
    w2_cp.wait()                                    # prefetched behind layer 1
    s = jnp.dot(h.astype(jnp.bfloat16), w2_vmem[...],
                preferred_element_type=jnp.float32)
    h = jnp.dot(adj, s.astype(jnp.bfloat16), preferred_element_type=jnp.float32)
    h = jnp.maximum(h + bias_ref[1:2, 0:d2], 0.0)

    # ---- layer 3:  adj @ (h @ W3) + b3, ReLU ---------------------------------
    w3_cp.wait()
    s = jnp.dot(h.astype(jnp.bfloat16), w3_vmem[...],
                preferred_element_type=jnp.float32)
    h = jnp.dot(adj, s.astype(jnp.bfloat16), preferred_element_type=jnp.float32)
    h = jnp.maximum(h + bias_ref[2:3, 0:d3], 0.0)

    # ---- layer 4:  adj @ (h @ W4) + b4 (no ReLU; lanes padded to 128) --------
    s = jnp.dot(h.astype(jnp.bfloat16), w4_ref[...],
                preferred_element_type=jnp.float32)
    h = jnp.dot(adj, s.astype(jnp.bfloat16), preferred_element_type=jnp.float32)
    h = h + bias_ref[3:4, 0:d4]

    out_ref[...] = h.astype(out_ref.dtype)          # unmasked lane-dense store


def _vmem_spec(arr):
    nd = arr.ndim
    return pl.BlockSpec(arr.shape, lambda *_: (0,) * nd)


def prepare_gcn4_operands(adj, params):
    """One-time conversion / packing of the graph + parameters.

    Hoisted out of the per-forward path so the hot path issues zero XLA
    convert ops (the previous revision re-cast ~740 KiB of f32 every call).
    """
    (w1, b1), (w2, b2), (w3, b3), (w4, b4) = params
    nhid = w4.shape[1]
    d4_pad = max(128, ((nhid + 127) // 128) * 128)          # lane-dense layer 4
    slab_w = max(w1.shape[1], w2.shape[1], w3.shape[1], d4_pad)

    adj_bf = adj.astype(jnp.bfloat16)
    w1_bf = w1.astype(jnp.bfloat16)
    w2_bf = w2.astype(jnp.bfloat16)
    w3_bf = w3.astype(jnp.bfloat16)
    w4_pad = jnp.zeros((w4.shape[0], d4_pad), jnp.float32)
    w4_pad = w4_pad.at[:, :nhid].set(w4).astype(jnp.bfloat16)

    # Pack all biases into one f32 slab (one DMA instead of four tiny ones).
    bias = jnp.zeros((4, slab_w), jnp.float32)
    bias = bias.at[0, : b1.shape[0]].set(b1)
    bias = bias.at[1, : b2.shape[0]].set(b2)
    bias = bias.at[2, : b3.shape[0]].set(b3)
    bias = bias.at[3, : b4.shape[0]].set(b4)

    return (adj_bf, w1_bf, w2_bf, w3_bf, w4_pad, bias)


def gcn4_forward(x, operands, *, nhid):
    """Hot-path forward: one fused pallas_call, zero per-call dtype conversion."""
    adj_bf, w1_bf, w2_bf, w3_bf, w4_pad, bias = operands
    n = x.shape[0]
    d4_pad = w4_pad.shape[1]

    out = pl.pallas_call(
        gcn4_fused_kernel,
        out_shape=jax.ShapeDtypeStruct((n, d4_pad), jnp.float32),
        in_specs=[
            _vmem_spec(x),                       # x    (auto DMA -> VMEM)
            _vmem_spec(adj_bf),                  # adj
            _vmem_spec(w1_bf),                   # W1
            pl.BlockSpec(memory_space=pl.ANY),   # W2: raw HBM ref, manual DMA
            pl.BlockSpec(memory_space=pl.ANY),   # W3: raw HBM ref, manual DMA
            _vmem_spec(w4_pad),                  # W4 (padded to 128 lanes)
            _vmem_spec(bias),                    # packed bias slab
        ],
        out_specs=pl.BlockSpec((n, d4_pad), lambda *_: (0, 0)),
        scratch_shapes=[
            pltpu.VMEM(w2_bf.shape, jnp.bfloat16),   # W2 landing buffer
            pltpu.VMEM(w3_bf.shape, jnp.bfloat16),   # W3 landing buffer
            pltpu.SemaphoreType.DMA((2,)),
        ],
        # Actual footprint is well under 2 MiB; modest scoped request is safe
        # on v7x (64 MiB physical VMEM) as well as v5e/v6e (128 MiB).
        compiler_params=pltpu.CompilerParams(vmem_limit_bytes=8 << 20),
    )(x, adj_bf, w1_bf, w2_bf, w3_bf, w4_pad, bias)

    return out[:, :nhid]                         # drop lane padding (tiny slice)


def gcn_vanilla_4_layers_forward(x, adj, params):
    """Convenience wrapper matching the original (x, adj, params) signature.
    For repeated forwards, call prepare_gcn4_operands once and reuse it."""
    nhid = params[3][0].shape[1]
    return gcn4_forward(x, prepare_gcn4_operands(adj, params), nhid=nhid)


def init_gc_params(key, fin, fout):
    """Matches GraphConvolution.reset_parameters: U(-stdv, stdv), stdv=1/sqrt(fout)."""
    stdv = 1.0 / (fout ** 0.5)
    kw, kb = jax.random.split(key)
    w = jax.random.uniform(kw, (fin, fout), jnp.float32, minval=-stdv, maxval=stdv)
    b = jax.random.uniform(kb, (fout,), jnp.float32, minval=-stdv, maxval=stdv)
    return w, b


def reference_forward_f32(x, adj, params):
    """Pure-f32 reference with the original association adj @ (x @ W)."""
    (w1, b1), (w2, b2), (w3, b3), (w4, b4) = params
    h = jnp.maximum(adj @ (x @ w1) + b1, 0.0)
    h = jnp.maximum(adj @ (h @ w2) + b2, 0.0)
    h = jnp.maximum(adj @ (h @ w3) + b3, 0.0)
    return adj @ (h @ w4) + b4


def reference_forward_bf16_matched(x, adj, params):
    """Mirrors the kernel's exact cast / reassociation scheme (bf16 in, f32 acc)."""
    (w1, b1), (w2, b2), (w3, b3), (w4, b4) = params
    bf = jnp.bfloat16
    adj_b = adj.astype(bf)
    ax = jnp.dot(adj_b, x.astype(bf), preferred_element_type=jnp.float32)
    h = jnp.dot(ax.astype(bf), w1.astype(bf), preferred_element_type=jnp.float32)
    h = jnp.maximum(h + b1, 0.0)
    for w, b, relu in ((w2, b2, True), (w3, b3, True), (w4, b4, False)):
        s = jnp.dot(h.astype(bf), w.astype(bf), preferred_element_type=jnp.float32)
        h = jnp.dot(adj_b, s.astype(bf), preferred_element_type=jnp.float32) + b
        if relu:
            h = jnp.maximum(h, 0.0)
    return h


if __name__ == "__main__":
    N, NFEAT, NHID = 64, 32, 16
    DROPOUT = 0.5  # unused in eval-mode forward

    key = jax.random.PRNGKey(0)
    kx, kadj, k1, k2, k3, k4 = jax.random.split(key, 6)

    # node features
    x = jax.random.normal(kx, (N, NFEAT), jnp.float32)

    # symmetric, row-normalized adjacency with self loops (typical GCN input)
    a = (jax.random.uniform(kadj, (N, N)) < 0.1).astype(jnp.float32)
    a = jnp.maximum(a, a.T) + jnp.eye(N, dtype=jnp.float32)
    adj = a / jnp.sum(a, axis=1, keepdims=True)

    params = [
        init_gc_params(k1, NFEAT, 512),
        init_gc_params(k2, 512, 256),
        init_gc_params(k3, 256, 128),
        init_gc_params(k4, 128, NHID),
    ]

    # One-time packing/casting, hoisted out of the per-forward hot path.
    prepared = prepare_gcn4_operands(adj, params)
    forward = jax.jit(functools.partial(gcn4_forward, nhid=NHID))

    emb = forward(x, prepared)
    emb = jax.block_until_ready(emb)

    ref_bf = reference_forward_bf16_matched(x, adj, params)
    ref_f32 = reference_forward_f32(x, adj, params)

    assert emb.shape == (N, NHID)
    # tight vs. a reference that uses the same bf16/f32 scheme ...
    assert jnp.allclose(emb, ref_bf, atol=1e-2, rtol=1e-2)
    # ... and loose vs. the pure-f32 reference (bf16 MXU inputs change ~1e-3 level)
    assert jnp.allclose(emb, ref_f32, atol=5e-2, rtol=5e-2)

    print("KERNEL_OK")
</pallas_src>

<mosaic_0001>
module attributes {stable_mosaic.version = 11 : i64} {
  func.func @gcn4_fused_kernel(%arg0: memref<64x32xf32, #tpu.memory_space<vmem>>, %arg1: memref<64x64xbf16, #tpu.memory_space<vmem>>, %arg2: memref<32x512xbf16, #tpu.memory_space<vmem>>, %arg3: memref<512x256xbf16, #tpu.memory_space<any>>, %arg4: memref<256x128xbf16, #tpu.memory_space<any>>, %arg5: memref<128x128xbf16, #tpu.memory_space<vmem>>, %arg6: memref<4x512xf32, #tpu.memory_space<vmem>>, %arg7: memref<64x128xf32, #tpu.memory_space<vmem>>, %arg8: memref<512x256xbf16, #tpu.memory_space<vmem>>, %arg9: memref<256x128xbf16, #tpu.memory_space<vmem>>, %arg10: memref<2x!tpu.dma_semaphore, #tpu.memory_space<semaphore_mem>>) attributes {dimension_semantics = [], scalar_prefetch = 0 : i64, scratch_operands = 3 : i64, tpu.core_type = #tpu.core_type<tc>} {
    %c0_i32 = arith.constant 0 : i32
    %0 = tpu.memref_slice %arg10[%c0_i32] : memref<2x!tpu.dma_semaphore, #tpu.memory_space<semaphore_mem>> -> memref<1x!tpu.dma_semaphore, #tpu.memory_space<semaphore_mem>>
    %1 = tpu.memref_squeeze %0 : memref<1x!tpu.dma_semaphore, #tpu.memory_space<semaphore_mem>> -> memref<!tpu.dma_semaphore, #tpu.memory_space<semaphore_mem>>
    tpu.enqueue_dma source(%arg3 : memref<512x256xbf16, #tpu.memory_space<any>>) target(%arg8 : memref<512x256xbf16, #tpu.memory_space<vmem>>) target_semaphore(%1 : memref<!tpu.dma_semaphore, #tpu.memory_space<semaphore_mem>>)
    %c1_i32 = arith.constant 1 : i32
    %2 = tpu.memref_slice %arg10[%c1_i32] : memref<2x!tpu.dma_semaphore, #tpu.memory_space<semaphore_mem>> -> memref<1x!tpu.dma_semaphore, #tpu.memory_space<semaphore_mem>>
    %3 = tpu.memref_squeeze %2 : memref<1x!tpu.dma_semaphore, #tpu.memory_space<semaphore_mem>> -> memref<!tpu.dma_semaphore, #tpu.memory_space<semaphore_mem>>
    tpu.enqueue_dma source(%arg4 : memref<256x128xbf16, #tpu.memory_space<any>>) target(%arg9 : memref<256x128xbf16, #tpu.memory_space<vmem>>) target_semaphore(%3 : memref<!tpu.dma_semaphore, #tpu.memory_space<semaphore_mem>>)
    %c0 = arith.constant 0 : index
    %c0_0 = arith.constant 0 : index
    %4 = vector.load %arg1[%c0, %c0_0] : memref<64x64xbf16, #tpu.memory_space<vmem>>, vector<64x64xbf16>
    %c0_1 = arith.constant 0 : index
    %c0_2 = arith.constant 0 : index
    %5 = vector.load %arg0[%c0_1, %c0_2] : memref<64x32xf32, #tpu.memory_space<vmem>>, vector<64x32xf32>
    %6 = arith.truncf %5 : vector<64x32xf32> to vector<64x32xbf16>
    %cst = arith.constant dense<0.000000e+00> : vector<64x32xf32>
    %7 = tpu.matmul %4, %6, %cst {dimension_numbers = #tpu.dot_dimension_numbers<[1], [0], [0], [1], [0, 0, 1, 1], [], []>} : vector<64x64xbf16>, vector<64x32xbf16>, vector<64x32xf32> -> vector<64x32xf32>
    %8 = arith.truncf %7 : vector<64x32xf32> to vector<64x32xbf16>
    %c0_3 = arith.constant 0 : index
    %c0_4 = arith.constant 0 : index
    %9 = vector.load %arg2[%c0_3, %c0_4] : memref<32x512xbf16, #tpu.memory_space<vmem>>, vector<32x512xbf16>
    %cst_5 = arith.constant dense<0.000000e+00> : vector<64x512xf32>
    %10 = tpu.matmul %8, %9, %cst_5 {dimension_numbers = #tpu.dot_dimension_numbers<[1], [0], [0], [1], [0, 0, 1, 1], [], []>} : vector<64x32xbf16>, vector<32x512xbf16>, vector<64x512xf32> -> vector<64x512xf32>
    %c0_6 = arith.constant 0 : index
    %c0_7 = arith.constant 0 : index
    %11 = vector.load %arg6[%c0_6, %c0_7] : memref<4x512xf32, #tpu.memory_space<vmem>>, vector<1x512xf32>
    %12 = vector.broadcast %11 : vector<1x512xf32> to vector<64x512xf32>
    %13 = arith.addf %10, %12 : vector<64x512xf32>
    %cst_8 = arith.constant 0.000000e+00 : f32
    %14 = vector.broadcast %cst_8 : f32 to vector<64x512xf32>
    %15 = arith.maximumf %13, %14 : vector<64x512xf32>
    %c0_i32_9 = arith.constant 0 : i32
    %16 = tpu.memref_slice %arg10[%c0_i32_9] : memref<2x!tpu.dma_semaphore, #tpu.memory_space<semaphore_mem>> -> memref<1x!tpu.dma_semaphore, #tpu.memory_space<semaphore_mem>>
    %17 = tpu.memref_squeeze %16 : memref<1x!tpu.dma_semaphore, #tpu.memory_space<semaphore_mem>> -> memref<!tpu.dma_semaphore, #tpu.memory_space<semaphore_mem>>
    tpu.wait_dma2 semaphore(%17 : memref<!tpu.dma_semaphore, #tpu.memory_space<semaphore_mem>>) src(%arg3 : memref<512x256xbf16, #tpu.memory_space<any>>) dst(%arg8 : memref<512x256xbf16, #tpu.memory_space<vmem>>)
    %18 = arith.truncf %15 : vector<64x512xf32> to vector<64x512xbf16>
    %c0_10 = arith.constant 0 : index
    %c0_11 = arith.constant 0 : index
    %19 = vector.load %arg8[%c0_10, %c0_11] : memref<512x256xbf16, #tpu.memory_space<vmem>>, vector<512x256xbf16>
    %cst_12 = arith.constant dense<0.000000e+00> : vector<64x256xf32>
    %20 = tpu.matmul %18, %19, %cst_12 {dimension_numbers = #tpu.dot_dimension_numbers<[1], [0], [0], [1], [0, 0, 1, 1], [], []>} : vector<64x512xbf16>, vector<512x256xbf16>, vector<64x256xf32> -> vector<64x256xf32>
    %21 = arith.truncf %20 : vector<64x256xf32> to vector<64x256xbf16>
    %cst_13 = arith.constant dense<0.000000e+00> : vector<64x256xf32>
    %22 = tpu.matmul %4, %21, %cst_13 {dimension_numbers = #tpu.dot_dimension_numbers<[1], [0], [0], [1], [0, 0, 1, 1], [], []>} : vector<64x64xbf16>, vector<64x256xbf16>, vector<64x256xf32> -> vector<64x256xf32>
    %c1 = arith.constant 1 : index
    %c0_14 = arith.constant 0 : index
    %23 = vector.load %arg6[%c1, %c0_14] : memref<4x512xf32, #tpu.memory_space<vmem>>, vector<1x256xf32>
    %24 = vector.broadcast %23 : vector<1x256xf32> to vector<64x256xf32>
    %25 = arith.addf %22, %24 : vector<64x256xf32>
    %cst_15 = arith.constant 0.000000e+00 : f32
    %26 = vector.broadcast %cst_15 : f32 to vector<64x256xf32>
    %27 = arith.maximumf %25, %26 : vector<64x256xf32>
    %c1_i32_16 = arith.constant 1 : i32
    %28 = tpu.memref_slice %arg10[%c1_i32_16] : memref<2x!tpu.dma_semaphore, #tpu.memory_space<semaphore_mem>> -> memref<1x!tpu.dma_semaphore, #tpu.memory_space<semaphore_mem>>
    %29 = tpu.memref_squeeze %28 : memref<1x!tpu.dma_semaphore, #tpu.memory_space<semaphore_mem>> -> memref<!tpu.dma_semaphore, #tpu.memory_space<semaphore_mem>>
    tpu.wait_dma2 semaphore(%29 : memref<!tpu.dma_semaphore, #tpu.memory_space<semaphore_mem>>) src(%arg4 : memref<256x128xbf16, #tpu.memory_space<any>>) dst(%arg9 : memref<256x128xbf16, #tpu.memory_space<vmem>>)
    %30 = arith.truncf %27 : vector<64x256xf32> to vector<64x256xbf16>
    %c0_17 = arith.constant 0 : index
    %c0_18 = arith.constant 0 : index
    %31 = vector.load %arg9[%c0_17, %c0_18] : memref<256x128xbf16, #tpu.memory_space<vmem>>, vector<256x128xbf16>
    %cst_19 = arith.constant dense<0.000000e+00> : vector<64x128xf32>
    %32 = tpu.matmul %30, %31, %cst_19 {dimension_numbers = #tpu.dot_dimension_numbers<[1], [0], [0], [1], [0, 0, 1, 1], [], []>} : vector<64x256xbf16>, vector<256x128xbf16>, vector<64x128xf32> -> vector<64x128xf32>
    %33 = arith.truncf %32 : vector<64x128xf32> to vector<64x128xbf16>
    %cst_20 = arith.constant dense<0.000000e+00> : vector<64x128xf32>
    %34 = tpu.matmul %4, %33, %cst_20 {dimension_numbers = #tpu.dot_dimension_numbers<[1], [0], [0], [1], [0, 0, 1, 1], [], []>} : vector<64x64xbf16>, vector<64x128xbf16>, vector<64x128xf32> -> vector<64x128xf32>
    %c2 = arith.constant 2 : index
    %c0_21 = arith.constant 0 : index
    %35 = vector.load %arg6[%c2, %c0_21] : memref<4x512xf32, #tpu.memory_space<vmem>>, vector<1x128xf32>
    %36 = vector.broadcast %35 : vector<1x128xf32> to vector<64x128xf32>
    %37 = arith.addf %34, %36 : vector<64x128xf32>
    %cst_22 = arith.constant 0.000000e+00 : f32
    %38 = vector.broadcast %cst_22 : f32 to vector<64x128xf32>
    %39 = arith.maximumf %37, %38 : vector<64x128xf32>
    %40 = arith.truncf %39 : vector<64x128xf32> to vector<64x128xbf16>
    %c0_23 = arith.constant 0 : index
    %c0_24 = arith.constant 0 : index
    %41 = vector.load %arg5[%c0_23, %c0_24] : memref<128x128xbf16, #tpu.memory_space<vmem>>, vector<128x128xbf16>
    %cst_25 = arith.constant dense<0.000000e+00> : vector<64x128xf32>
    %42 = tpu.matmul %40, %41, %cst_25 {dimension_numbers = #tpu.dot_dimension_numbers<[1], [0], [0], [1], [0, 0, 1, 1], [], []>} : vector<64x128xbf16>, vector<128x128xbf16>, vector<64x128xf32> -> vector<64x128xf32>
    %43 = arith.truncf %42 : vector<64x128xf32> to vector<64x128xbf16>
    %cst_26 = arith.constant dense<0.000000e+00> : vector<64x128xf32>
    %44 = tpu.matmul %4, %43, %cst_26 {dimension_numbers = #tpu.dot_dimension_numbers<[1], [0], [0], [1], [0, 0, 1, 1], [], []>} : vector<64x64xbf16>, vector<64x128xbf16>, vector<64x128xf32> -> vector<64x128xf32>
    %c3 = arith.constant 3 : index
    %c0_27 = arith.constant 0 : index
    %45 = vector.load %arg6[%c3, %c0_27] : memref<4x512xf32, #tpu.memory_space<vmem>>, vector<1x128xf32>
    %46 = vector.broadcast %45 : vector<1x128xf32> to vector<64x128xf32>
    %47 = arith.addf %44, %46 : vector<64x128xf32>
    %c0_28 = arith.constant 0 : index
    %c0_29 = arith.constant 0 : index
    %48 = vector.load %arg7[%c0_28, %c0_29] : memref<64x128xf32, #tpu.memory_space<vmem>>, vector<64x128xf32>
    tpu.vector_store %arg7[%c0_28, %c0_29], %47 {strides = array<i32>} : memref<64x128xf32, #tpu.memory_space<vmem>>, vector<64x128xf32>,
    return
  }
}

</mosaic_0001>

<bundles_post_ra>
// kernel: gcn4_forward.1
= control target key start
LH: loop header
LB: loop body
LE: loop exit
PB: predicated region body
PF: predicated region fallthrough
CT: control target
= control target key end

     0   :  { %12 = vsyncpa [#allocation6], 0  ;;  %s2599_s0 = inlined_call_operand.vmem [shape: f32[64,32], index: 0, kind: input, shape index: {}]   ;;  %s2600_s1 = inlined_call_operand.vmem [shape: bf16[64,64], index: 1, kind: input, shape index: {}]   ;;  %s2601_s2 = inlined_call_operand.vmem [shape: bf16[32,512], index: 2, kind: input, shape index: {}]   ;;  %s2602_s3 = inlined_call_operand.hbm [shape: bf16[512,256], index: 3, kind: input, shape index: {}]   ;;  %s2603_s4 = inlined_call_operand.hbm [shape: bf16[256,128], index: 4, kind: input, shape index: {}]   ;;  %s2604_s5 = inlined_call_operand.hbm [shape: bf16[128,128], index: 5, kind: input, shape index: {}]   ;;  %s2605_s6 = inlined_call_operand.hbm [shape: f32[4,512], index: 6, kind: input, shape index: {}]   ;;  %s2606_s7 = inlined_call_operand.vmem [shape: f32[64,128], index: 7, kind: output, shape index: {}]  }
   0x1   :  { %13 = vsyncpa [#allocation8], 0  ;;  %s2143_s24 = smov [#allocation5]  }
   0x2   :  { %s25_s25 = sshll.u32 %s2143_s24, 4  ;;  %s26_s25 = int_to_ptr.vmem [resolvable:$true] %s25_s25 }
   0x3   :  { %s2063_s26 = scalar_lea.vmem %s26_s25, 1024  ;;  %p2068_p1 = scmp.lt.s32.totalorder %s26_s25, %s26_s25 }
   0x4   :  { %p2064_p0 = scmp.ne.s32.totalorder %s26_s25, %s2063_s26  ;;  %p2069_p2 = scmp.lt.s32.totalorder %s2063_s26, %s2063_s26 }
   0x6   :  { %p2070_p3 = por %p2069_p2, %p2068_p1 }
   0x8   :  { %p2071_p4 = pnand %p2070_p3, %p2064_p0 }
   0xa   :  { %2074 = shalt.err (!%p2071_p4)
}
   0xb   :  { %s2144_s27 = smov 64   ;;  %s2145_s28 = smov 4  }
   0xc   :  { %31 = dma.hbm_to_vmem [thread:$0]  %s2604_s5, 1024, %s26_s25, [#allocation6], %s2144_s27, %s2144_s27, %s2145_s28  }
   0xd   :  { %s2146_s8 = smov [#allocation7]  }
   0xe   :  { %s38_s9 = sshll.u32 %s2146_s8, 4  ;;  %s39_s9 = int_to_ptr.vmem [resolvable:$true] %s38_s9 }
   0xf   :  { %s2083_s10 = scalar_lea.vmem %s39_s9, 256  ;;  %p2088_p6 = scmp.lt.s32.totalorder %s39_s9, %s39_s9 }
  0x10   :  { %p2084_p5 = scmp.ne.s32.totalorder %s39_s9, %s2083_s10  ;;  %p2089_p7 = scmp.lt.s32.totalorder %s2083_s10, %s2083_s10 }
  0x12   :  { %p2090_p8 = por %p2089_p7, %p2088_p6 }
  0x14   :  { %p2091_p9 = pnand %p2090_p8, %p2084_p5 }
  0x16   :  { %2094 = shalt.err (!%p2091_p9)
}
  0x17   :  { %41 = dma.hbm_to_vmem [thread:$0]  %s2605_s6, 256, %s39_s9, [#allocation8]  }
  0x18   :  { %2135 = dma.done.wait [#allocation6], 1024  }
  0x19   :  { %2136 = vsyncadd [#allocation6], 4294966272 }
  0x1a   :  { %2137 = dma.done.wait [#allocation8], 256  }
  0x1b   :  { %2138 = vsyncadd [#allocation8], 4294967040  ;;  %v86_v0 = vld [vmem:[%s2599_s0 + $0x30] sm:$0xff]  ;;  %v87_v1 = vld [vmem:[%s2599_s0 + $0x38] sm:$0xff]  ;;  %vm112_vm0 = vcmask 523264   ;;  %v2609_v24 = vmov 0  }
  0x1c   :  { %v84_v2 = vld [vmem:[%s2599_s0 + $0x20] sm:$0xff]  ;;  %v91_v3 = vpack.c.bf16 %v87_v1, %v86_v0  ;;  %v85_v4 = vld [vmem:[%s2599_s0 + $0x28] sm:$0xff]  ;;  %v82_v6 = vld [vmem:[%s2599_s0 + $0x10] sm:$0xff]  ;;  %309 = vmatprep.mubr.bf16.mxu1 %v2609_v24  ;;  %vm264_vm1 = vcmask 261120   ;;  %s2149_s25 = smov [#allocation3]  }
  0x1d   :  { %v90_v5 = vpack.c.bf16 %v85_v4, %v84_v2  ;;  %v83_v7 = vld [vmem:[%s2599_s0 + $0x18] sm:$0xff]  ;;  %v2217_v8 = vld [vmem:[%s2600_s1] sm:$0xff]   ;;  %v81_v11 = vld [vmem:[%s2599_s0 + $0x8] sm:$0xff]  ;;  %s68_s26 = sshll.u32 %s2149_s25, 4  ;;  %s69_s26 = int_to_ptr.vmem [resolvable:$true] %s68_s26 }
  0x1e   :  { %1840 = vmatprep.subr.bf16.mxu0 %v91_v3  ;;  %v89_v9 = vpack.c.bf16 %v83_v7, %v82_v6  ;;  %v80_v10 = vld [vmem:[%s2599_s0] sm:$0xff]  ;;  %1848 = vmatprep.mubr.msk.bf16.mxu0 %vm112_vm0, %v2217_v8  ;;  %v1925_v13 = vld [vmem:[%s2601_s2 + $0x2c] ss:$16 sps:$4 sm:$0xff]   ;;  %v2238_v15 = vld [vmem:[%s2600_s1 + $0x10] sm:$0xff]  }
  0x1f   :  { %1841 = vmatpush3.bf16.msra.mxu0 %v91_v3  ;;  %v88_v12 = vpack.c.bf16 %v81_v11, %v80_v10  ;;  %v2233_v14 = vld [vmem:[%s2600_s1 + $0x8] sm:$0xff]   ;;  %v2250_v17 = vld [vmem:[%s2600_s1 + $0x18] sm:$0xff]   ;;  %v1929_v18 = vld [vmem:[%s2601_s2 + $0x24] ss:$16 sps:$4 sm:$0xff]  }
  0x20   :  { %1842 = vmatprep.subr.bf16.mxu0 %v90_v5  ;;  %v1923_v16 = vld [vmem:[%s2601_s2 + $0x28] ss:$16 sps:$4 sm:$0xff]   ;;  %v1928_v20 = vld [vmem:[%s2601_s2 + $0xc] ss:$16 sps:$4 sm:$0xff]   ;;  %v1931_v21 = vld [vmem:[%s2601_s2 + $0x20] ss:$16 sps:$4 sm:$0xff]   ;;  %289 = vmatprep.subr.bf16.mxu1 %v1929_v18 }
  0x21   :  { %v1926_v19 = vld [vmem:[%s2601_s2 + $0x8] ss:$16 sps:$4 sm:$0xff]   ;;  %290 = vmatpush1.bf16.msra.mxu1 %v1931_v21  ;;  %v1932_v22 = vld [vmem:[%s2601_s2 + $0x4] ss:$16 sps:$4 sm:$0xff]   ;;  %v1934_v23 = vld [vmem:[%s2601_s2] ss:$16 sps:$4 sm:$0xff]  }
  0x22   :  { %291 = vmatprep.subr.bf16.mxu1 %v1932_v22  ;;  %s2148_s2 = smov [#allocation2]  }
  0x23   :  { %1843 = vmatpush3.bf16.msra.mxu0 %v90_v5  ;;  %s56_s24 = sshll.u32 %s2148_s2, 4  ;;  %s57_s24 = int_to_ptr.vmem [resolvable:$true] %s56_s24 }
  0x24   :  { %1844 = vmatprep.subr.bf16.mxu0 %v89_v9  ;;  %s2103_s27 = scalar_lea.vmem %s57_s24, 8192  ;;  %p2108_p11 = scmp.lt.s32.totalorder %s57_s24, %s57_s24 }
  0x25   :  { %292 = vmatpush1.bf16.msra.mxu1 %v1934_v23  ;;  %p2104_p10 = scmp.ne.s32.totalorder %s57_s24, %s2103_s27  ;;  %p2109_p12 = scmp.lt.s32.totalorder %s2103_s27, %s2103_s27 }
  0x27   :  { %1845 = vmatpush3.bf16.msra.mxu0 %v89_v9  ;;  %p2110_p13 = por %p2109_p12, %p2108_p11 }
  0x28   :  { %1846 = vmatprep.subr.bf16.mxu0 %v88_v12 }
  0x29   :  { %p2111_p0 = pnand %p2110_p13, %p2104_p10 }
  0x2b   :  { %1847 = vmatpush3.bf16.msra.mxu0 %v88_v12 }
  0x2c   :  { %362 = vmatprep.subr.bf16.mxu0 %v1925_v13 }
  0x2e   :  { %1849 = vmatmul.mubr.msk.bf16.vlgmr.msra.gmra.mxu0 %vm112_vm0, %v2233_v14 }
  0x2f   :  { %1852 = vmatprep.mubr.msk.bf16.mxu0 %vm112_vm0, %v2238_v15  ;;  %363 = vmatpush1.bf16.msra.mxu0 %v1923_v16 }
  0x30   :  { %364 = vmatprep.subr.bf16.mxu0 %v1928_v20 }
  0x33   :  { %365 = vmatpush1.bf16.msra.mxu0 %v1926_v19 }
  0x36   :  { %1853 = vmatmul.mubr.msk.bf16.gmra.mxu0 %vm112_vm0, %v2250_v17 }
  0x37   :  { %382 = vmatprep.mubr.bf16.mxu0 %v2609_v24 }
  0xee   :  { %v1850_v25 = vpop.f32.mrf.mxu0 }
  0xf0   :  { %v159_v26 = vpop.f32.mrf.mxu0 }
  0xf2   :  { %v1851_v27 = vpop.f32.mrf.mxu0 }
  0xf3   :  { %v191_v32 = vpack.c.bf16 %v1851_v27, %v1850_v25 }
  0xf4   :  { %v162_v28 = vpop.f32.mrf.mxu0 }
  0xf5   :  { %v190_v29 = vpack.c.bf16 %v162_v28, %v159_v26 }
  0xf6   :  { %v1854_v30 = vpop.f32.mrf.mxu0 }
  0xf7   :  { %1652 = vmatmul.mubr.msk.bf16.vlgmr.msra.gmra.mxu1 %vm264_vm1, %v190_v29  ;;  %1656 = vmatmul.mubr.msk.bf16.vlgmr.msra.gmra.mxu0 %vm264_vm1, %v190_v29 }
  0xf8   :  { %319 = vmatprep.mubr.bf16.mxu1 %v2609_v24  ;;  %392 = vmatprep.mubr.bf16.mxu0 %v2609_v24  ;;  %v175_v31 = vpop.f32.mrf.mxu0 }
  0xfa   :  { %v1855_v33 = vpop.f32.mrf.mxu0 }
  0xfb   :  { %v193_v36 = vpack.c.bf16 %v1855_v33, %v1854_v30 }
  0xfc   :  { %v178_v34 = vpop.f32.mrf.mxu0 }
  0xfd   :  { %v192_v35 = vpack.c.bf16 %v178_v34, %v175_v31 }
  0xff   :  { %1653 = vmatmul.mubr.msk.bf16.gmra.mxu1 %vm264_vm1, %v191_v32  ;;  %1657 = vmatmul.mubr.msk.bf16.gmra.mxu0 %vm264_vm1, %v191_v32 }
 0x100   :  { %329 = vmatprep.mubr.bf16.mxu1 %v2609_v24  ;;  %402 = vmatprep.mubr.bf16.mxu0 %v2609_v24 }
 0x107   :  { %1654 = vmatmul.mubr.msk.bf16.gmra.mxu1 %vm264_vm1, %v192_v35  ;;  %1658 = vmatmul.mubr.msk.bf16.gmra.mxu0 %vm264_vm1, %v192_v35 }
 0x108   :  { %339 = vmatprep.mubr.bf16.mxu1 %v2609_v24  ;;  %412 = vmatprep.mubr.bf16.mxu0 %v2609_v24 }
 0x10f   :  { %1655 = vmatmul.mubr.msk.bf16.gmra.mxu1 %vm264_vm1, %v193_v36  ;;  %1659 = vmatmul.mubr.msk.bf16.gmra.mxu0 %vm264_vm1, %v193_v36 }
 0x110   :  { %2114 = shalt.err (!%p2111_p0)  }
 0x111   :  { %59 = dma.hbm_to_vmem [thread:$0]  %s2602_s3, 8192, %s57_s24, [#allocation4] }
 0x112   :  { %s2123_s30 = scalar_lea.vmem %s69_s26, 2048  ;;  %p2128_p2 = scmp.lt.s32.totalorder %s69_s26, %s69_s26 }
 0x113   :  { %p2124_p1 = scmp.ne.s32.totalorder %s69_s26, %s2123_s30  ;;  %p2129_p3 = scmp.lt.s32.totalorder %s2123_s30, %s2123_s30 }
 0x115   :  { %p2130_p4 = por %p2129_p3, %p2128_p2 }
 0x117   :  { %p2131_p5 = pnand %p2130_p4, %p2124_p1 }
 0x119   :  { %2134 = shalt.err (!%p2131_p5)  }
 0x11a   :  { %71 = dma.hbm_to_vmem [thread:$0]  %s2603_s4, 2048, %s69_s26, [#allocation4 + $0x1]  ;;  %v204_v37 = vlaneseq  ;;  %v202_v41 = vld [vmem:[#allocation7] ss:$4 sm:$0xf] }
 0x11c   :  { %v2294_v38 = vshrl.u32 %v204_v37, 7 }
 0x11e   :  { %v2608_v39 = vsub.s32 0, %v2294_v38  ;;  %v214_v40 = vsub.s32 2, %v2294_v38  ;;  %v2607_v42 = vsub.s32 1, %v2294_v38  ;;  %v218_v43 = vsub.s32 3, %v2294_v38 }
 0x120   :  { %v2302_v44 = vrot.slane %v202_v41, %v2608_v39  ;;  %v2304_v45 = vrot.slane %v202_v41, %v214_v40  ;;  %v2308_v46 = vrot.slane %v202_v41, %v2607_v42  ;;  %v2310_v47 = vrot.slane %v202_v41, %v218_v43 }
 0x1b7   :  { %v311_v48 = vpop.f32.mrf.mxu1  ;;  %v384_v49 = vpop.f32.mrf.mxu0 }
 0x1b8   :  { %v2313_v50 = vadd.f32 %v311_v48, %v2302_v44  ;;  %v2316_v51 = vadd.f32 %v384_v49, %v2304_v45 }
 0x1b9   :  { %v313_v52 = vpop.f32.mrf.mxu1  ;;  %v386_v53 = vpop.f32.mrf.mxu0 }
 0x1ba   :  { %v423_v54 = vmax.f32 %v2313_v50, 0.0  ;;  %v425_v55 = vmax.f32 %v2316_v51, 0.0  ;;  %v2321_v56 = vadd.f32 %v313_v52, %v2308_v46  ;;  %v2324_v57 = vadd.f32 %v386_v53, %v2310_v47 }
 0x1bb   :  { %v315_v58 = vpop.f32.mrf.mxu1  ;;  %v388_v59 = vpop.f32.mrf.mxu0 }
 0x1bc   :  { %v424_v60 = vmax.f32 %v2321_v56, 0.0  ;;  %v426_v61 = vmax.f32 %v2324_v57, 0.0  ;;  %v2329_v62 = vadd.f32 %v315_v58, %v2302_v44  ;;  %v2332_v63 = vadd.f32 %v388_v59, %v2304_v45 }
 0x1bd   :  { %v317_v0 = vpop.f32.mrf.mxu1  ;;  %v390_v1 = vpop.f32.mrf.mxu0 }
 0x1be   :  { %v427_v2 = vmax.f32 %v2329_v62, 0.0  ;;  %v429_v3 = vmax.f32 %v2332_v63, 0.0  ;;  %v2337_v4 = vadd.f32 %v317_v0, %v2308_v46  ;;  %v2340_v5 = vadd.f32 %v390_v1, %v2310_v47 }
 0x1bf   :  { %v321_v6 = vpop.f32.mrf.mxu1  ;;  %v394_v7 = vpop.f32.mrf.mxu0 }
 0x1c0   :  { %v428_v9 = vmax.f32 %v2337_v4, 0.0  ;;  %v430_v10 = vmax.f32 %v2340_v5, 0.0  ;;  %v2345_v11 = vadd.f32 %v321_v6, %v2302_v44  ;;  %v2348_v12 = vadd.f32 %v394_v7, %v2304_v45 }
 0x1c1   :  { %v323_v13 = vpop.f32.mrf.mxu1  ;;  %v396_v16 = vpop.f32.mrf.mxu0 }
 0x1c2   :  { %v431_v18 = vmax.f32 %v2345_v11, 0.0  ;;  %v433_v19 = vmax.f32 %v2348_v12, 0.0  ;;  %v2353_v20 = vadd.f32 %v323_v13, %v2308_v46  ;;  %v2356_v21 = vadd.f32 %v396_v16, %v2310_v47 }
 0x1c3   :  { %v325_v22 = vpop.f32.mrf.mxu1  ;;  %v398_v23 = vpop.f32.mrf.mxu0 }
 0x1c4   :  { %v432_v25 = vmax.f32 %v2353_v20, 0.0  ;;  %v434_v26 = vmax.f32 %v2356_v21, 0.0  ;;  %v2361_v27 = vadd.f32 %v325_v22, %v2302_v44  ;;  %v2364_v28 = vadd.f32 %v398_v23, %v2304_v45 }
 0x1c5   :  { %v327_v29 = vpop.f32.mrf.mxu1  ;;  %v400_v30 = vpop.f32.mrf.mxu0 }
 0x1c6   :  { %v435_v31 = vmax.f32 %v2361_v27, 0.0  ;;  %v2369_v33 = vadd.f32 %v327_v29, %v2308_v46  ;;  %v2372_v34 = vadd.f32 %v400_v30, %v2310_v47 }
 0x1c7   :  { %v331_v35 = vpop.f32.mrf.mxu1  ;;  %v404_v36 = vpop.f32.mrf.mxu0 }
 0x1c8   :  { %v436_v37 = vmax.f32 %v2369_v33, 0.0  ;;  %v438_v40 = vmax.f32 %v2372_v34, 0.0  ;;  %v2377_v41 = vadd.f32 %v331_v35, %v2302_v44  ;;  %v2380_v43 = vadd.f32 %v404_v36, %v2304_v45 }
 0x1c9   :  { %v333_v48 = vpop.f32.mrf.mxu1  ;;  %v406_v49 = vpop.f32.mrf.mxu0 }
 0x1ca   :  { %v2385_v58 = vadd.f32 %v333_v48, %v2308_v46  ;;  %v2388_v59 = vadd.f32 %v406_v49, %v2310_v47 }
 0x1cb   :  { %v335_v0 = vpop.f32.mrf.mxu1  ;;  %v408_v1 = vpop.f32.mrf.mxu0 }
 0x1cc   :  { %v2393_v13 = vadd.f32 %v335_v0, %v2302_v44  ;;  %v2396_v16 = vadd.f32 %v408_v1, %v2304_v45 }
 0x1cd   :  { %v337_v22 = vpop.f32.mrf.mxu1  ;;  %v410_v23 = vpop.f32.mrf.mxu0 }
 0x1ce   :  { %v2401_v35 = vadd.f32 %v337_v22, %v2308_v46  ;;  %v2404_v36 = vadd.f32 %v410_v23, %v2310_v47 }
 0x1cf   :  { %v341_v48 = vpop.f32.mrf.mxu1  ;;  %v414_v49 = vpop.f32.mrf.mxu0 }
 0x1d0   :  { %v2409_v1 = vadd.f32 %v341_v48, %v2302_v44  ;;  %v2412_v39 = vadd.f32 %v414_v49, %v2304_v45 }
 0x1d1   :  { %v343_v24 = vpop.f32.mrf.mxu1  ;;  %v416_v30 = vpop.f32.mrf.mxu0 }
 0x1d2   :  { %v2417_v23 = vadd.f32 %v343_v24, %v2308_v46  ;;  %v2420_v29 = vadd.f32 %v416_v30, %v2310_v47 }
 0x1d3   :  { %v345_v52 = vpop.f32.mrf.mxu1  ;;  %v418_v42 = vpop.f32.mrf.mxu0 }
 0x1d4   :  { %v448_v48 = vmax.f32 %v2417_v23, 0.0  ;;  %v2425_v49 = vadd.f32 %v345_v52, %v2302_v44  ;;  %v2428_v0 = vadd.f32 %v418_v42, %v2304_v45 }
 0x1d5   :  { %v347_v22 = vpop.f32.mrf.mxu1  ;;  %v420_v53 = vpop.f32.mrf.mxu0 }
 0x1d6   :  { %v451_v24 = vmax.f32 %v2425_v49, 0.0  ;;  %v2433_v30 = vadd.f32 %v347_v22, %v2308_v46  ;;  %v2436_v32 = vadd.f32 %v420_v53, %v2310_v47 }
 0x1d8   :  { %v452_v7 = vmax.f32 %v2433_v30, 0.0  ;;  %v454_v44 = vmax.f32 %v2436_v32, 0.0 }
 0x1d9   :  { %2139 = dma.done.wait [#allocation4], 8192 }
 0x1da   :  { %2140 = vsyncadd [#allocation4], 4294959104  ;;  %v460_v42 = vpack.c.bf16 %v428_v9, %v424_v60  ;;  %v462_v45 = vpack.c.bf16 %v430_v10, %v426_v61  ;;  %v1935_v46 = vld [vmem:[#allocation2 + $0x74] ss:$8 sps:$4 sm:$0xff]   ;;  %v1939_v52 = vld [vmem:[#allocation2 + $0x70] ss:$8 sps:$4 sm:$0xff]   ;;  %v466_v50 = vpack.c.bf16 %v438_v40, %v434_v26  ;;  %v463_v51 = vpack.c.bf16 %v435_v31, %v431_v18 }
 0x1db   :  { %v1937_v47 = vld [vmem:[#allocation2 + $0x174] ss:$8 sps:$4 sm:$0xff]   ;;  %859 = vmatprep.subr.bf16.mxu1 %v1935_v46  ;;  %v1940_v53 = vld [vmem:[#allocation2 + $0x170] ss:$8 sps:$4 sm:$0xff]   ;;  %v1941_v22 = vld [vmem:[#allocation2 + $0x64] ss:$8 sps:$4 sm:$0xff]   ;;  %v472_v27 = vpack.c.bf16 %v452_v7, %v448_v48 }
 0x1dc   :  { %891 = vmatprep.mubr.bf16.mxu1 %v460_v42  ;;  %964 = vmatprep.mubr.bf16.mxu0 %v462_v45  ;;  %v1943_v56 = vld [vmem:[#allocation2 + $0x164] ss:$8 sps:$4 sm:$0xff]   ;;  %v1945_v6 = vld [vmem:[#allocation2 + $0x60] ss:$8 sps:$4 sm:$0xff]   ;;  %v1947_v57 = vld [vmem:[#allocation2 + $0x54] ss:$8 sps:$4 sm:$0xff]  }
 0x1dd   :  { %932 = vmatprep.subr.bf16.mxu0 %v1937_v47  ;;  %860 = vmatpush1.bf16.msra.mxu1 %v1939_v52  ;;  %v1946_v60 = vld [vmem:[#allocation2 + $0x160] ss:$8 sps:$4 sm:$0xff]   ;;  %v1949_v4 = vld [vmem:[#allocation2 + $0x154] ss:$8 sps:$4 sm:$0xff]   ;;  %v1951_v5 = vld [vmem:[#allocation2 + $0x50] ss:$8 sps:$4 sm:$0xff]  }
 0x1de   :  { %933 = vmatpush1.bf16.msra.mxu0 %v1940_v53  ;;  %861 = vmatprep.subr.bf16.mxu1 %v1941_v22  ;;  %v1952_v61 = vld [vmem:[#allocation2 + $0x150] ss:$8 sps:$4 sm:$0xff]   ;;  %v1953_v9 = vld [vmem:[#allocation2 + $0x44] ss:$8 sps:$4 sm:$0xff]   ;;  %v1957_v42 = vld [vmem:[#allocation2 + $0x40] ss:$8 sps:$4 sm:$0xff]  }
 0x1df   :  { %934 = vmatprep.subr.bf16.mxu0 %v1943_v56  ;;  %v1955_v10 = vld [vmem:[#allocation2 + $0x144] ss:$8 sps:$4 sm:$0xff]   ;;  %v1958_v45 = vld [vmem:[#allocation2 + $0x140] ss:$8 sps:$4 sm:$0xff]   ;;  %v1959_v46 = vld [vmem:[#allocation2 + $0x34] ss:$8 sps:$4 sm:$0xff]  }
 0x1e0   :  { %v1961_v47 = vld [vmem:[#allocation2 + $0x134] ss:$8 sps:$4 sm:$0xff]   ;;  %v1963_v52 = vld [vmem:[#allocation2 + $0x30] ss:$8 sps:$4 sm:$0xff]   ;;  %v1965_v22 = vld [vmem:[#allocation2 + $0x24] ss:$8 sps:$4 sm:$0xff]  }
 0x1e1   :  { %862 = vmatpush1.bf16.msra.mxu1 %v1945_v6  ;;  %v1964_v53 = vld [vmem:[#allocation2 + $0x130] ss:$8 sps:$4 sm:$0xff]   ;;  %v1967_v6 = vld [vmem:[#allocation2 + $0x124] ss:$8 sps:$4 sm:$0xff]   ;;  %v1969_v56 = vld [vmem:[#allocation2 + $0x20] ss:$8 sps:$4 sm:$0xff]  }
 0x1e2   :  { %935 = vmatpush1.bf16.msra.mxu0 %v1946_v60  ;;  %863 = vmatprep.subr.bf16.mxu1 %v1947_v57  ;;  %v1970_v60 = vld [vmem:[#allocation2 + $0x120] ss:$8 sps:$4 sm:$0xff]   ;;  %v1971_v57 = vld [vmem:[#allocation2 + $0x14] ss:$8 sps:$4 sm:$0xff]   ;;  %v2612_v62 = vmax.f32 %v2385_v58, 0.0  ;;  %v2613_v63 = vmax.f32 %v2401_v35, 0.0 }
 0x1e3   :  { %936 = vmatprep.subr.bf16.mxu0 %v1949_v4  ;;  %v1973_v4 = vld [vmem:[#allocation2 + $0x114] ss:$8 sps:$4 sm:$0xff]   ;;  %v2615_v20 = vmax.f32 %v2404_v36, 0.0  ;;  %v2616_v11 = vmax.f32 %v2377_v41, 0.0  ;;  %v2617_v12 = vmax.f32 %v2393_v13, 0.0  ;;  %v2621_v33 = vmax.f32 %v2409_v1, 0.0 }
 0x1e4   :  { %v2623_v40 = vmax.f32 %v2428_v0, 0.0 }
 0x1e5   :  { %864 = vmatpush1.bf16.msra.mxu1 %v1951_v5  ;;  %v1975_v5 = vld [vmem:[#allocation2 + $0x10] ss:$8 sps:$4 sm:$0xff]   ;;  %v467_v18 = vpack.c.bf16 %v2617_v12, %v2616_v11  ;;  %v471_v34 = vpack.c.bf16 %v451_v24, %v2621_v33 }
 0x1e6   :  { %937 = vmatpush1.bf16.msra.mxu0 %v1952_v61  ;;  %865 = vmatprep.subr.bf16.mxu1 %v1953_v9  ;;  %v1976_v61 = vld [vmem:[#allocation2 + $0x110] ss:$8 sps:$4 sm:$0xff]   ;;  %v1977_v9 = vld [vmem:[#allocation2 + $0x4] ss:$8 sps:$4 sm:$0xff]  }
 0x1e7   :  { %938 = vmatprep.subr.bf16.mxu0 %v1955_v10  ;;  %v1979_v10 = vld [vmem:[#allocation2 + $0x104] ss:$8 sps:$4 sm:$0xff]  }
 0x1e9   :  { %866 = vmatpush1.bf16.msra.mxu1 %v1957_v42  ;;  %v1981_v42 = vld [vmem:[#allocation2] ss:$8 sps:$4 sm:$0xff]  }
 0x1ea   :  { %939 = vmatpush1.bf16.msra.mxu0 %v1958_v45  ;;  %867 = vmatprep.subr.bf16.mxu1 %v1959_v46  ;;  %v1982_v45 = vld [vmem:[#allocation2 + $0x100] ss:$8 sps:$4 sm:$0xff]   ;;  %v1983_v46 = vld [vmem:[#allocation2 + $0xf4] ss:$8 sps:$4 sm:$0xff]  }
 0x1eb   :  { %940 = vmatprep.subr.bf16.mxu0 %v1961_v47  ;;  %v1985_v47 = vld [vmem:[#allocation2 + $0x1f4] ss:$8 sps:$4 sm:$0xff]  }
 0x1ed   :  { %868 = vmatpush1.bf16.msra.mxu1 %v1963_v52  ;;  %v1987_v52 = vld [vmem:[#allocation2 + $0xf0] ss:$8 sps:$4 sm:$0xff]  }
 0x1ee   :  { %941 = vmatpush1.bf16.msra.mxu0 %v1964_v53  ;;  %869 = vmatprep.subr.bf16.mxu1 %v1965_v22  ;;  %v1988_v53 = vld [vmem:[#allocation2 + $0x1f0] ss:$8 sps:$4 sm:$0xff]   ;;  %v1989_v22 = vld [vmem:[#allocation2 + $0xe4] ss:$8 sps:$4 sm:$0xff]  }
 0x1ef   :  { %942 = vmatprep.subr.bf16.mxu0 %v1967_v6  ;;  %v1991_v6 = vld [vmem:[#allocation2 + $0x1e4] ss:$8 sps:$4 sm:$0xff]  }
 0x1f1   :  { %870 = vmatpush1.bf16.msra.mxu1 %v1969_v56  ;;  %v1993_v56 = vld [vmem:[#allocation2 + $0xe0] ss:$8 sps:$4 sm:$0xff]  }
 0x1f2   :  { %943 = vmatpush1.bf16.msra.mxu0 %v1970_v60  ;;  %871 = vmatprep.subr.bf16.mxu1 %v1971_v57  ;;  %v1994_v60 = vld [vmem:[#allocation2 + $0x1e0] ss:$8 sps:$4 sm:$0xff]   ;;  %v1995_v57 = vld [vmem:[#allocation2 + $0xd4] ss:$8 sps:$4 sm:$0xff]  }
 0x1f3   :  { %944 = vmatprep.subr.bf16.mxu0 %v1973_v4  ;;  %v1997_v4 = vld [vmem:[#allocation2 + $0x1d4] ss:$8 sps:$4 sm:$0xff]  }
 0x1f5   :  { %872 = vmatpush1.bf16.msra.mxu1 %v1975_v5  ;;  %v1999_v5 = vld [vmem:[#allocation2 + $0xd0] ss:$8 sps:$4 sm:$0xff]  }
 0x1f6   :  { %945 = vmatpush1.bf16.msra.mxu0 %v1976_v61  ;;  %873 = vmatprep.subr.bf16.mxu1 %v1977_v9  ;;  %v2000_v61 = vld [vmem:[#allocation2 + $0x1d0] ss:$8 sps:$4 sm:$0xff]   ;;  %v2001_v9 = vld [vmem:[#allocation2 + $0xc4] ss:$8 sps:$4 sm:$0xff]  }
 0x1f7   :  { %946 = vmatprep.subr.bf16.mxu0 %v1979_v10  ;;  %v2003_v10 = vld [vmem:[#allocation2 + $0x1c4] ss:$8 sps:$4 sm:$0xff]  }
 0x1f9   :  { %874 = vmatpush1.bf16.msra.mxu1 %v1981_v42  ;;  %v2005_v42 = vld [vmem:[#allocation2 + $0xc0] ss:$8 sps:$4 sm:$0xff]  }
 0x1fa   :  { %947 = vmatpush1.bf16.msra.mxu0 %v1982_v45  ;;  %875 = vmatprep.subr.bf16.mxu1 %v1983_v46  ;;  %v2006_v45 = vld [vmem:[#allocation2 + $0x1c0] ss:$8 sps:$4 sm:$0xff]   ;;  %v2007_v46 = vld [vmem:[#allocation2 + $0xb4] ss:$8 sps:$4 sm:$0xff]  }
 0x1fb   :  { %948 = vmatprep.subr.bf16.mxu0 %v1985_v47  ;;  %v2009_v47 = vld [vmem:[#allocation2 + $0x1b4] ss:$8 sps:$4 sm:$0xff]  }
 0x1fd   :  { %876 = vmatpush2.bf16.msra.mxu1 %v1987_v52  ;;  %v2011_v52 = vld [vmem:[#allocation2 + $0xb0] ss:$8 sps:$4 sm:$0xff]  }
 0x1fe   :  { %949 = vmatpush2.bf16.msra.mxu0 %v1988_v53  ;;  %877 = vmatprep.subr.bf16.mxu1 %v1989_v22  ;;  %v2012_v53 = vld [vmem:[#allocation2 + $0x1b0] ss:$8 sps:$4 sm:$0xff]   ;;  %v2013_v22 = vld [vmem:[#allocation2 + $0xa4] ss:$8 sps:$4 sm:$0xff]  }
 0x1ff   :  { %950 = vmatprep.subr.bf16.mxu0 %v1991_v6  ;;  %v2015_v6 = vld [vmem:[#allocation2 + $0x1a4] ss:$8 sps:$4 sm:$0xff]  }
 0x201   :  { %878 = vmatpush2.bf16.msra.mxu1 %v1993_v56  ;;  %v2017_v56 = vld [vmem:[#allocation2 + $0xa0] ss:$8 sps:$4 sm:$0xff]  }
 0x202   :  { %951 = vmatpush2.bf16.msra.mxu0 %v1994_v60  ;;  %879 = vmatprep.subr.bf16.mxu1 %v1995_v57  ;;  %v2018_v60 = vld [vmem:[#allocation2 + $0x1a0] ss:$8 sps:$4 sm:$0xff]   ;;  %v2019_v57 = vld [vmem:[#allocation2 + $0x94] ss:$8 sps:$4 sm:$0xff]  }
 0x203   :  { %952 = vmatprep.subr.bf16.mxu0 %v1997_v4  ;;  %v2021_v4 = vld [vmem:[#allocation2 + $0x194] ss:$8 sps:$4 sm:$0xff]  }
 0x205   :  { %880 = vmatpush2.bf16.msra.mxu1 %v1999_v5  ;;  %v2023_v5 = vld [vmem:[#allocation2 + $0x90] ss:$8 sps:$4 sm:$0xff]  }
 0x206   :  { %953 = vmatpush2.bf16.msra.mxu0 %v2000_v61  ;;  %881 = vmatprep.subr.bf16.mxu1 %v2001_v9  ;;  %v2024_v61 = vld [vmem:[#allocation2 + $0x190] ss:$8 sps:$4 sm:$0xff]   ;;  %v2025_v9 = vld [vmem:[#allocation2 + $0x84] ss:$8 sps:$4 sm:$0xff]  }
 0x207   :  { %954 = vmatprep.subr.bf16.mxu0 %v2003_v10  ;;  %v2027_v10 = vld [vmem:[#allocation2 + $0x184] ss:$8 sps:$4 sm:$0xff]  }
 0x209   :  { %882 = vmatpush2.bf16.msra.mxu1 %v2005_v42  ;;  %v2029_v42 = vld [vmem:[#allocation2 + $0x80] ss:$8 sps:$4 sm:$0xff]  }
 0x20a   :  { %955 = vmatpush2.bf16.msra.mxu0 %v2006_v45  ;;  %883 = vmatprep.subr.bf16.mxu1 %v2007_v46  ;;  %v2030_v45 = vld [vmem:[#allocation2 + $0x180] ss:$8 sps:$4 sm:$0xff]   ;;  %v459_v46 = vpack.c.bf16 %v427_v2, %v423_v54  ;;  %v2611_v54 = vmax.f32 %v2364_v28, 0.0  ;;  %v468_v2 = vpack.c.bf16 %v2613_v63, %v2612_v62  ;;  %v2620_v28 = vmax.f32 %v2420_v29, 0.0 }
 0x20b   :  { %956 = vmatprep.subr.bf16.mxu0 %v2009_v47  ;;  %v461_v47 = vpack.c.bf16 %v429_v3, %v425_v55  ;;  %v2614_v3 = vmax.f32 %v2388_v59, 0.0 }
 0x20c   :  { %v465_v55 = vpack.c.bf16 %v2611_v54, %v433_v19  ;;  %v2618_v19 = vmax.f32 %v2380_v43, 0.0  ;;  %v474_v31 = vpack.c.bf16 %v454_v44, %v2620_v28  ;;  %v2624_v43 = vmov 0  }
 0x20d   :  { %884 = vmatpush2.bf16.msra.mxu1 %v2011_v52  ;;  %v464_v52 = vpack.c.bf16 %v436_v37, %v432_v25  ;;  %v470_v21 = vpack.c.bf16 %v2615_v20, %v2614_v3  ;;  %v2619_v25 = vmax.f32 %v2396_v16, 0.0  ;;  %v2622_v37 = vmax.f32 %v2412_v39, 0.0 }
 0x20e   :  { %957 = vmatpush2.bf16.msra.mxu0 %v2012_v53  ;;  %885 = vmatprep.subr.bf16.mxu1 %v2013_v22 }
 0x20f   :  { %958 = vmatprep.subr.bf16.mxu0 %v2015_v6  ;;  %v469_v26 = vpack.c.bf16 %v2619_v25, %v2618_v19  ;;  %v473_v41 = vpack.c.bf16 %v2623_v40, %v2622_v37  ;;  %v1014_v40 = vld [vmem:[#allocation7 + $0x1] ss:$4 sm:$0x3] }
 0x211   :  { %886 = vmatpush2.bf16.msra.mxu1 %v2017_v56 }
 0x212   :  { %959 = vmatpush2.bf16.msra.mxu0 %v2018_v60  ;;  %887 = vmatprep.subr.bf16.mxu1 %v2019_v57 }
 0x213   :  { %960 = vmatprep.subr.bf16.mxu0 %v2021_v4 }
 0x215   :  { %888 = vmatpush2.bf16.msra.mxu1 %v2023_v5 }
 0x216   :  { %961 = vmatpush2.bf16.msra.mxu0 %v2024_v61  ;;  %889 = vmatprep.subr.bf16.mxu1 %v2025_v9 }
 0x217   :  { %962 = vmatprep.subr.bf16.mxu0 %v2027_v10 }
 0x219   :  { %890 = vmatpush2.bf16.msra.mxu1 %v2029_v42 }
 0x21a   :  { %963 = vmatpush2.bf16.msra.mxu0 %v2030_v45 }
 0x21c   :  { %892 = vmatmul.mubr.bf16.vlgmr.msra.gmra.mxu1 %v459_v46 }
 0x21d   :  { %965 = vmatmul.mubr.bf16.vlgmr.msra.gmra.mxu0 %v461_v47  ;;  %901 = vmatprep.mubr.bf16.mxu1 %v464_v52 }
 0x21e   :  { %974 = vmatprep.mubr.bf16.mxu0 %v466_v50 }
 0x224   :  { %902 = vmatmul.mubr.bf16.gmra.mxu1 %v463_v51 }
 0x225   :  { %975 = vmatmul.mubr.bf16.gmra.mxu0 %v465_v55  ;;  %911 = vmatprep.mubr.bf16.mxu1 %v468_v2 }
 0x226   :  { %984 = vmatprep.mubr.bf16.mxu0 %v470_v21 }
 0x22c   :  { %912 = vmatmul.mubr.bf16.gmra.mxu1 %v467_v18 }
 0x22d   :  { %985 = vmatmul.mubr.bf16.gmra.mxu0 %v469_v26  ;;  %921 = vmatprep.mubr.bf16.mxu1 %v472_v27 }
 0x22e   :  { %994 = vmatprep.mubr.bf16.mxu0 %v474_v31 }
 0x234   :  { %922 = vmatmul.mubr.bf16.gmra.mxu1 %v471_v34 }
 0x235   :  { %995 = vmatmul.mubr.bf16.gmra.mxu0 %v473_v41  ;;  %1058 = vmatprep.mubr.bf16.mxu1 %v2624_v43  ;;  %v2625_v41 = vsub.s32 0, %v2294_v38 }
 0x2dc   :  { %v893_v32 = vpop.f32.mrf.mxu1 }
 0x2dd   :  { %v966_v58 = vpop.f32.mrf.mxu0 }
 0x2de   :  { %v895_v59 = vpop.f32.mrf.mxu1  ;;  %v967_v34 = vadd.f32 %v966_v58, %v893_v32  ;;  %v1019_v32 = vrot.slane %v1014_v40, %v2625_v41  ;;  %v2626_v58 = vsub.s32 1, %v2294_v38 }
 0x2df   :  { %v968_v7 = vpop.f32.mrf.mxu0 }
 0x2e0   :  { %v897_v13 = vpop.f32.mrf.mxu1  ;;  %v969_v27 = vadd.f32 %v968_v7, %v895_v59  ;;  %v1023_v59 = vrot.slane %v1014_v40, %v2626_v58 }
 0x2e1   :  { %v970_v16 = vpop.f32.mrf.mxu0 }
 0x2e2   :  { %v899_v29 = vpop.f32.mrf.mxu1  ;;  %v971_v28 = vadd.f32 %v970_v16, %v897_v13 }
 0x2e3   :  { %v972_v35 = vpop.f32.mrf.mxu0 }
 0x2e4   :  { %v903_v36 = vpop.f32.mrf.mxu1  ;;  %v973_v19 = vadd.f32 %v972_v35, %v899_v29  ;;  %v1005_v37 = vpack.c.bf16 %v971_v28, %v967_v34 }
 0x2e5   :  { %v976_v1 = vpop.f32.mrf.mxu0 }
 0x2e6   :  { %v905_v23 = vpop.f32.mrf.mxu1  ;;  %v977_v26 = vadd.f32 %v976_v1, %v903_v36  ;;  %v1006_v33 = vpack.c.bf16 %v973_v19, %v969_v27 }
 0x2e7   :  { %v978_v48 = vpop.f32.mrf.mxu0 }
 0x2e8   :  { %v907_v39 = vpop.f32.mrf.mxu1  ;;  %v979_v11 = vadd.f32 %v978_v48, %v905_v23 }
 0x2e9   :  { %v980_v49 = vpop.f32.mrf.mxu0 }
 0x2ea   :  { %v909_v0 = vpop.f32.mrf.mxu1  ;;  %v981_v12 = vadd.f32 %v980_v49, %v907_v39 }
 0x2eb   :  { %v982_v24 = vpop.f32.mrf.mxu0 }
 0x2ec   :  { %v913_v30 = vpop.f32.mrf.mxu1  ;;  %v983_v3 = vadd.f32 %v982_v24, %v909_v0  ;;  %v1007_v31 = vpack.c.bf16 %v981_v12, %v977_v26 }
 0x2ed   :  { %v986_v44 = vpop.f32.mrf.mxu0 }
 0x2ee   :  { %v915_v53 = vpop.f32.mrf.mxu1  ;;  %v987_v21 = vadd.f32 %v986_v44, %v913_v30  ;;  %v1008_v25 = vpack.c.bf16 %v983_v3, %v979_v11 }
 0x2ef   :  { %v988_v22 = vpop.f32.mrf.mxu0 }
 0x2f0   :  { %v917_v6 = vpop.f32.mrf.mxu1  ;;  %v989_v55 = vadd.f32 %v988_v22, %v915_v53 }
 0x2f1   :  { %v990_v56 = vpop.f32.mrf.mxu0 }
 0x2f2   :  { %v919_v60 = vpop.f32.mrf.mxu1  ;;  %v991_v63 = vadd.f32 %v990_v56, %v917_v6 }
 0x2f3   :  { %v992_v57 = vpop.f32.mrf.mxu0 }
 0x2f4   :  { %v923_v4 = vpop.f32.mrf.mxu1  ;;  %v993_v52 = vadd.f32 %v992_v57, %v919_v60  ;;  %v1009_v18 = vpack.c.bf16 %v991_v63, %v987_v21 }
 0x2f5   :  { %v996_v5 = vpop.f32.mrf.mxu0 }
 0x2f6   :  { %v925_v61 = vpop.f32.mrf.mxu1  ;;  %v997_v54 = vadd.f32 %v996_v5, %v923_v4  ;;  %v1010_v20 = vpack.c.bf16 %v993_v52, %v989_v55 }
 0x2f7   :  { %v998_v9 = vpop.f32.mrf.mxu0 }
 0x2f8   :  { %v927_v10 = vpop.f32.mrf.mxu1  ;;  %v999_v50 = vadd.f32 %v998_v9, %v925_v61 }
 0x2f9   :  { %v1000_v42 = vpop.f32.mrf.mxu0 }
 0x2fa   :  { %v1001_v45 = vadd.f32 %v1000_v42, %v927_v10  ;;  %v929_v46 = vpop.f32.mrf.mxu1 }
 0x2fb   :  { %v1002_v47 = vpop.f32.mrf.mxu0 }
 0x2fc   :  { %v1003_v51 = vadd.f32 %v1002_v47, %v929_v46  ;;  %v1011_v2 = vpack.c.bf16 %v1001_v45, %v997_v54 }
 0x2fe   :  { %v1012_v62 = vpack.c.bf16 %v1003_v51, %v999_v50 }
 0x300   :  { %1034 = vmatprep.subr.bf16.mxu1 %v1012_v62 }
 0x301   :  { %1035 = vmatpush1.bf16.msra.mxu1 %v1011_v2 }
 0x302   :  { %1036 = vmatprep.subr.bf16.mxu1 %v1010_v20 }
 0x305   :  { %1037 = vmatpush1.bf16.msra.mxu1 %v1009_v18 }
 0x306   :  { %1038 = vmatprep.subr.bf16.mxu1 %v1008_v25 }
 0x309   :  { %1039 = vmatpush1.bf16.msra.mxu1 %v1007_v31 }
 0x30a   :  { %1040 = vmatprep.subr.bf16.mxu1 %v1006_v33 }
 0x30d   :  { %1041 = vmatpush1.bf16.msra.mxu1 %v1005_v37 }
 0x310   :  { %1724 = vmatmul.mubr.msk.bf16.vlgmr.msra.gmra.mxu1 %vm112_vm0, %v2217_v8 }
 0x311   :  { %1068 = vmatprep.mubr.bf16.mxu1 %v2624_v43 }
 0x318   :  { %1725 = vmatmul.mubr.msk.bf16.gmra.mxu1 %vm112_vm0, %v2233_v14 }
 0x319   :  { %1078 = vmatprep.mubr.bf16.mxu1 %v2624_v43 }
 0x320   :  { %1726 = vmatmul.mubr.msk.bf16.gmra.mxu1 %vm112_vm0, %v2238_v15 }
 0x321   :  { %1088 = vmatprep.mubr.bf16.mxu1 %v2624_v43 }
 0x328   :  { %1727 = vmatmul.mubr.msk.bf16.gmra.mxu1 %vm112_vm0, %v2250_v17 }
 0x3d0   :  { %v1060_v7 = vpop.f32.mrf.mxu1 }
 0x3d1   :  { %v2520_v13 = vadd.f32 %v1060_v7, %v1019_v32 }
 0x3d2   :  { %v1062_v16 = vpop.f32.mrf.mxu1 }
 0x3d3   :  { %v1099_v29 = vmax.f32 %v2520_v13, 0.0  ;;  %v1063_v35 = vadd.f32 %v1062_v16, %v1023_v59 }
 0x3d4   :  { %v1064_v36 = vpop.f32.mrf.mxu1 }
 0x3d5   :  { %v1100_v1 = vmax.f32 %v1063_v35, 0.0  ;;  %v2523_v43 = vadd.f32 %v1064_v36, %v1019_v32 }
 0x3d6   :  { %v1066_v23 = vpop.f32.mrf.mxu1 }
 0x3d7   :  { %v1101_v48 = vmax.f32 %v2523_v43, 0.0  ;;  %v1067_v39 = vadd.f32 %v1066_v23, %v1023_v59 }
 0x3d8   :  { %v1070_v49 = vpop.f32.mrf.mxu1 }
 0x3d9   :  { %v1102_v0 = vmax.f32 %v1067_v39, 0.0  ;;  %v2526_v24 = vadd.f32 %v1070_v49, %v1019_v32 }
 0x3da   :  { %v1072_v38 = vpop.f32.mrf.mxu1 }
 0x3db   :  { %v1103_v30 = vmax.f32 %v2526_v24, 0.0  ;;  %v2529_v44 = vadd.f32 %v1072_v38, %v1023_v59 }
 0x3dc   :  { %v1074_v53 = vpop.f32.mrf.mxu1 }
 0x3dd   :  { %v1104_v22 = vmax.f32 %v2529_v44, 0.0  ;;  %v2532_v6 = vadd.f32 %v1074_v53, %v1019_v32 }
 0x3de   :  { %v1076_v56 = vpop.f32.mrf.mxu1 }
 0x3df   :  { %v1105_v60 = vmax.f32 %v2532_v6, 0.0  ;;  %v2535_v57 = vadd.f32 %v1076_v56, %v1023_v59 }
 0x3e0   :  { %v1080_v4 = vpop.f32.mrf.mxu1 }
 0x3e1   :  { %v1106_v5 = vmax.f32 %v2535_v57, 0.0  ;;  %v2538_v61 = vadd.f32 %v1080_v4, %v1019_v32 }
 0x3e2   :  { %v1082_v9 = vpop.f32.mrf.mxu1 }
 0x3e3   :  { %v1107_v10 = vmax.f32 %v2538_v61, 0.0  ;;  %v2541_v42 = vadd.f32 %v1082_v9, %v1023_v59 }
 0x3e4   :  { %v1084_v45 = vpop.f32.mrf.mxu1 }
 0x3e5   :  { %v1108_v46 = vmax.f32 %v2541_v42, 0.0  ;;  %v2544_v47 = vadd.f32 %v1084_v45, %v1019_v32 }
 0x3e6   :  { %v1086_v52 = vpop.f32.mrf.mxu1 }
 0x3e7   :  { %v1109_v50 = vmax.f32 %v2544_v47, 0.0  ;;  %v1087_v51 = vadd.f32 %v1086_v52, %v1023_v59 }
 0x3e8   :  { %v1090_v54 = vpop.f32.mrf.mxu1 }
 0x3e9   :  { %v1110_v55 = vmax.f32 %v1087_v51, 0.0  ;;  %v1091_v62 = vadd.f32 %v1090_v54, %v1019_v32 }
 0x3ea   :  { %v1092_v63 = vpop.f32.mrf.mxu1 }
 0x3eb   :  { %v1111_v2 = vmax.f32 %v1091_v62, 0.0  ;;  %v1093_v3 = vadd.f32 %v1092_v63, %v1023_v59 }
 0x3ec   :  { %v1094_v20 = vpop.f32.mrf.mxu1 }
 0x3ed   :  { %v1112_v21 = vmax.f32 %v1093_v3, 0.0  ;;  %v1095_v11 = vadd.f32 %v1094_v20, %v1019_v32 }
 0x3ee   :  { %v1096_v12 = vpop.f32.mrf.mxu1 }
 0x3ef   :  { %v1113_v18 = vmax.f32 %v1095_v11, 0.0  ;;  %v1097_v19 = vadd.f32 %v1096_v12, %v1023_v59 }
 0x3f1   :  { %v1114_v25 = vmax.f32 %v1097_v19, 0.0 }
 0x3f2   :  { %2141 = dma.done.wait [#allocation4 + $0x1], 2048 }
 0x3f3   :  { %2142 = vsyncadd [#allocation4 + $0x1], 4294965248  ;;  %v1120_v26 = vpack.c.bf16 %v1102_v0, %v1100_v1  ;;  %1864 = vmatprep.mubr.msk.bf16.mxu1 %vm112_vm0, %v2217_v8  ;;  %v2031_v27 = vld [vmem:[#allocation3 + $0x78] sm:$0xff]   ;;  %v2033_v31 = vld [vmem:[#allocation3 + $0x70] sm:$0xff]   ;;  %v1119_v23 = vpack.c.bf16 %v1101_v48, %v1099_v29  ;;  %v1122_v39 = vpack.c.bf16 %v1106_v5, %v1104_v22  ;;  %v1121_v49 = vpack.c.bf16 %v1105_v60, %v1103_v30 }
 0x3f4   :  { %v2032_v28 = vld [vmem:[#allocation3 + $0x38] sm:$0xff]   ;;  %1772 = vmatprep.subr.bf16.mxu0 %v2031_v27  ;;  %v2034_v33 = vld [vmem:[#allocation3 + $0x30] sm:$0xff]   ;;  %v2035_v34 = vld [vmem:[#allocation3 + $0x68] sm:$0xff]   ;;  %v1124_v0 = vpack.c.bf16 %v1110_v55, %v1108_v46  ;;  %v1123_v13 = vpack.c.bf16 %v1109_v50, %v1107_v10  ;;  %v1126_v38 = vpack.c.bf16 %v1114_v25, %v1112_v21  ;;  %v1125_v29 = vpack.c.bf16 %v1113_v18, %v1111_v2 }
 0x3f5   :  { %1287 = vmatprep.mubr.bf16.mxu0 %v1120_v26  ;;  %1773 = vmatpush3.bf16.msra.mxu0 %v2032_v28  ;;  %v2036_v37 = vld [vmem:[#allocation3 + $0x28] sm:$0xff]   ;;  %v2037_v40 = vld [vmem:[#allocation3 + $0x60] sm:$0xff]   ;;  %v2039_v32 = vld [vmem:[#allocation3 + $0x58] sm:$0xff]  }
 0x3f6   :  { %1774 = vmatprep.subr.bf16.mxu0 %v2033_v31  ;;  %v2038_v41 = vld [vmem:[#allocation3 + $0x20] sm:$0xff]   ;;  %v2040_v58 = vld [vmem:[#allocation3 + $0x18] sm:$0xff]   ;;  %v2041_v59 = vld [vmem:[#allocation3 + $0x50] sm:$0xff]  }
 0x3f7   :  { %v2042_v7 = vld [vmem:[#allocation3 + $0x10] sm:$0xff]   ;;  %v2043_v16 = vld [vmem:[#allocation3 + $0x48] sm:$0xff]   ;;  %v2045_v36 = vld [vmem:[#allocation3 + $0x40] sm:$0xff]  }
 0x3f8   :  { %v2044_v35 = vld [vmem:[#allocation3 + $0x8] sm:$0xff]   ;;  %v2046_v1 = vld [vmem:[#allocation3] sm:$0xff]   ;;  %v2047_v43 = vld [vmem:[#allocation5 + $0x38] sm:$0xff]  }
 0x3f9   :  { %1775 = vmatpush3.bf16.msra.mxu0 %v2034_v33  ;;  %v2048_v48 = vld [vmem:[#allocation5 + $0x30] sm:$0xff]   ;;  %v2049_v24 = vld [vmem:[#allocation5 + $0x28] sm:$0xff]   ;;  %v2050_v30 = vld [vmem:[#allocation5 + $0x20] sm:$0xff]  }
 0x3fa   :  { %1776 = vmatprep.subr.bf16.mxu0 %v2035_v34  ;;  %v2051_v44 = vld [vmem:[#allocation5 + $0x18] sm:$0xff]   ;;  %v2052_v18 = vld [vmem:[#allocation5 + $0x10] sm:$0xff]   ;;  %v2053_v19 = vld [vmem:[#allocation5 + $0x8] sm:$0xff]  }
 0x3fb   :  { %v2054_v25 = vld [vmem:[#allocation5] sm:$0xff]  }
 0x3fc   :  { %v1744_v28 = vld [vmem:[#allocation7 + $0x2] ss:$0 sm:$0xff] }
 0x3fd   :  { %1777 = vmatpush3.bf16.msra.mxu0 %v2036_v37 }
 0x3fe   :  { %1778 = vmatprep.subr.bf16.mxu0 %v2037_v40 }
 0x401   :  { %1779 = vmatpush3.bf16.msra.mxu0 %v2038_v41 }
 0x402   :  { %1780 = vmatprep.subr.bf16.mxu0 %v2039_v32 }
 0x405   :  { %1781 = vmatpush3.bf16.msra.mxu0 %v2040_v58 }
 0x406   :  { %1782 = vmatprep.subr.bf16.mxu0 %v2041_v59 }
 0x409   :  { %1783 = vmatpush3.bf16.msra.mxu0 %v2042_v7 }
 0x40a   :  { %1784 = vmatprep.subr.bf16.mxu0 %v2043_v16 }
 0x40d   :  { %1785 = vmatpush3.bf16.msra.mxu0 %v2044_v35 }
 0x40e   :  { %1786 = vmatprep.subr.bf16.mxu0 %v2045_v36 }
 0x411   :  { %1787 = vmatpush3.bf16.msra.mxu0 %v2046_v1 }
 0x412   :  { %1872 = vmatprep.subr.bf16.mxu0 %v2047_v43 }
 0x414   :  { %1288 = vmatmul.mubr.bf16.vlgmr.msra.gmra.mxu0 %v1119_v23 }
 0x415   :  { %1295 = vmatprep.mubr.bf16.mxu0 %v1122_v39  ;;  %1873 = vmatpush3.bf16.msra.mxu0 %v2047_v43 }
 0x416   :  { %1874 = vmatprep.subr.bf16.mxu0 %v2048_v48 }
 0x419   :  { %1875 = vmatpush3.bf16.msra.mxu0 %v2048_v48 }
 0x41a   :  { %1876 = vmatprep.subr.bf16.mxu0 %v2049_v24 }
 0x41c   :  { %1296 = vmatmul.mubr.bf16.gmra.mxu0 %v1121_v49 }
 0x41d   :  { %1303 = vmatprep.mubr.bf16.mxu0 %v1124_v0  ;;  %1877 = vmatpush3.bf16.msra.mxu0 %v2049_v24 }
 0x41e   :  { %1878 = vmatprep.subr.bf16.mxu0 %v2050_v30 }
 0x421   :  { %1879 = vmatpush3.bf16.msra.mxu0 %v2050_v30 }
 0x422   :  { %1880 = vmatprep.subr.bf16.mxu0 %v2051_v44 }
 0x424   :  { %1304 = vmatmul.mubr.bf16.gmra.mxu0 %v1123_v13 }
 0x425   :  { %1311 = vmatprep.mubr.bf16.mxu0 %v1126_v38  ;;  %1881 = vmatpush3.bf16.msra.mxu0 %v2051_v44 }
 0x426   :  { %1882 = vmatprep.subr.bf16.mxu0 %v2052_v18 }
 0x429   :  { %1883 = vmatpush3.bf16.msra.mxu0 %v2052_v18 }
 0x42a   :  { %1884 = vmatprep.subr.bf16.mxu0 %v2053_v19 }
 0x42c   :  { %1312 = vmatmul.mubr.bf16.gmra.mxu0 %v1125_v29 }
 0x42d   :  { %1885 = vmatpush3.bf16.msra.mxu0 %v2053_v19 }
 0x42e   :  { %1886 = vmatprep.subr.bf16.mxu0 %v2054_v25 }
 0x431   :  { %1887 = vmatpush3.bf16.msra.mxu0 %v2054_v25 }
 0x4d4   :  { %v1788_v53 = vpop.f32.mrf.mxu0 }
 0x4d6   :  { %v1789_v22 = vpop.f32.mrf.mxu0 }
 0x4d7   :  { %v1790_v11 = vadd.f32 %v1789_v22, %v1788_v53 }
 0x4d8   :  { %v1791_v6 = vpop.f32.mrf.mxu0 }
 0x4da   :  { %v1792_v56 = vpop.f32.mrf.mxu0 }
 0x4db   :  { %v1793_v20 = vadd.f32 %v1792_v56, %v1791_v6 }
 0x4dc   :  { %v1794_v60 = vpop.f32.mrf.mxu0 }
 0x4dd   :  { %v1320_v12 = vpack.c.bf16 %v1793_v20, %v1790_v11 }
 0x4de   :  { %v1795_v57 = vpop.f32.mrf.mxu0 }
 0x4df   :  { %v1796_v3 = vadd.f32 %v1795_v57, %v1794_v60 }
 0x4e0   :  { %v1797_v4 = vpop.f32.mrf.mxu0 }
 0x4e2   :  { %v1798_v5 = vpop.f32.mrf.mxu0 }
 0x4e3   :  { %v1799_v63 = vadd.f32 %v1798_v5, %v1797_v4 }
 0x4e4   :  { %v1800_v61 = vpop.f32.mrf.mxu0 }
 0x4e5   :  { %v1321_v21 = vpack.c.bf16 %v1799_v63, %v1796_v3 }
 0x4e6   :  { %v1801_v9 = vpop.f32.mrf.mxu0 }
 0x4e7   :  { %v1802_v55 = vadd.f32 %v1801_v9, %v1800_v61 }
 0x4e8   :  { %v1803_v10 = vpop.f32.mrf.mxu0 }
 0x4ea   :  { %v1804_v42 = vpop.f32.mrf.mxu0 }
 0x4eb   :  { %v1805_v50 = vadd.f32 %v1804_v42, %v1803_v10  ;;  %v1757_v42 = vld [vmem:[#allocation7 + $0x3] ss:$0 sm:$0xff] }
 0x4ec   :  { %v1806_v45 = vpop.f32.mrf.mxu0 }
 0x4ed   :  { %v1322_v2 = vpack.c.bf16 %v1805_v50, %v1802_v55 }
 0x4ee   :  { %v1807_v46 = vpop.f32.mrf.mxu0 }
 0x4ef   :  { %v1808_v51 = vadd.f32 %v1807_v46, %v1806_v45 }
 0x4f0   :  { %v1809_v47 = vpop.f32.mrf.mxu0 }
 0x4f2   :  { %v1810_v52 = vpop.f32.mrf.mxu0 }
 0x4f3   :  { %v1811_v54 = vadd.f32 %v1810_v52, %v1809_v47 }
 0x4f5   :  { %v1323_v62 = vpack.c.bf16 %v1811_v54, %v1808_v51 }
 0x4f7   :  { %1856 = vmatprep.subr.bf16.mxu1 %v1323_v62 }
 0x4f8   :  { %1857 = vmatpush3.bf16.msra.mxu1 %v1323_v62 }
 0x4f9   :  { %1858 = vmatprep.subr.bf16.mxu1 %v1322_v2 }
 0x4fc   :  { %1859 = vmatpush3.bf16.msra.mxu1 %v1322_v2 }
 0x4fd   :  { %1860 = vmatprep.subr.bf16.mxu1 %v1321_v21 }
 0x500   :  { %1861 = vmatpush3.bf16.msra.mxu1 %v1321_v21 }
 0x501   :  { %1862 = vmatprep.subr.bf16.mxu1 %v1320_v12 }
 0x504   :  { %1863 = vmatpush3.bf16.msra.mxu1 %v1320_v12 }
 0x507   :  { %1865 = vmatmul.mubr.msk.bf16.vlgmr.msra.gmra.mxu1 %vm112_vm0, %v2233_v14 }
 0x508   :  { %1868 = vmatprep.mubr.msk.bf16.mxu1 %vm112_vm0, %v2238_v15 }
 0x50f   :  { %1869 = vmatmul.mubr.msk.bf16.gmra.mxu1 %vm112_vm0, %v2250_v17 }
 0x510   :  { %1904 = vmatprep.mubr.msk.bf16.mxu1 %vm112_vm0, %v2217_v8 }
 0x5c7   :  { %v1866_v26 = vpop.f32.mrf.mxu1 }
 0x5c8   :  { %v1372_v37 = vadd.f32 %v1866_v26, %v1744_v28 }
 0x5c9   :  { %v1363_v27 = vpop.f32.mrf.mxu1 }
 0x5ca   :  { %v1364_v33 = vadd.f32 %v1744_v28, %v1363_v27  ;;  %v1396_v7 = vmax.f32 %v1372_v37, 0.0 }
 0x5cb   :  { %v1867_v31 = vpop.f32.mrf.mxu1 }
 0x5cc   :  { %v1375_v34 = vadd.f32 %v1867_v31, %v1744_v28  ;;  %v1394_v58 = vmax.f32 %v1364_v33, 0.0 }
 0x5cd   :  { %v1366_v40 = vpop.f32.mrf.mxu1 }
 0x5ce   :  { %v1367_v41 = vadd.f32 %v1744_v28, %v1366_v40  ;;  %v1397_v32 = vmax.f32 %v1375_v34, 0.0 }
 0x5cf   :  { %v1870_v8 = vpop.f32.mrf.mxu1 }
 0x5d0   :  { %v1395_v59 = vmax.f32 %v1367_v41, 0.0  ;;  %v1403_v36 = vpack.c.bf16 %v1397_v32, %v1396_v7  ;;  %v1388_v49 = vadd.f32 %v1870_v8, %v1744_v28 }
 0x5d1   :  { %v1379_v16 = vpop.f32.mrf.mxu1 }
 0x5d2   :  { %v1402_v35 = vpack.c.bf16 %v1395_v59, %v1394_v58  ;;  %v1380_v23 = vadd.f32 %v1744_v28, %v1379_v16  ;;  %v1400_v48 = vmax.f32 %v1388_v49, 0.0 }
 0x5d3   :  { %v1871_v1 = vpop.f32.mrf.mxu1 }
 0x5d4   :  { %v1391_v39 = vadd.f32 %v1871_v1, %v1744_v28  ;;  %1888 = vmatprep.mubr.bf16.mxu0 %v1402_v35  ;;  %v1398_v29 = vmax.f32 %v1380_v23, 0.0 }
 0x5d5   :  { %v1382_v0 = vpop.f32.mrf.mxu1  ;;  %1889 = vmatmul.mubr.bf16.vlgmr.msra.gmra.mxu0 %v1403_v36 }
 0x5d6   :  { %v1383_v13 = vadd.f32 %v1744_v28, %v1382_v0  ;;  %v1401_v38 = vmax.f32 %v1391_v39, 0.0 }
 0x5d8   :  { %v1399_v43 = vmax.f32 %v1383_v13, 0.0  ;;  %v1405_v30 = vpack.c.bf16 %v1401_v38, %v1400_v48 }
 0x5da   :  { %v1404_v24 = vpack.c.bf16 %v1399_v43, %v1398_v29 }
 0x5dc   :  { %1892 = vmatprep.mubr.bf16.mxu0 %v1404_v24 }
 0x5dd   :  { %1893 = vmatmul.mubr.bf16.gmra.mxu0 %v1405_v30 }
 0x695   :  { %v1890_v44 = vpop.f32.mrf.mxu0 }
 0x697   :  { %v1504_v53 = vpop.f32.mrf.mxu0 }
 0x699   :  { %v1891_v22 = vpop.f32.mrf.mxu0 }
 0x69a   :  { %v1536_v9 = vpack.c.bf16 %v1891_v22, %v1890_v44 }
 0x69b   :  { %v1507_v6 = vpop.f32.mrf.mxu0 }
 0x69c   :  { %v1535_v10 = vpack.c.bf16 %v1507_v6, %v1504_v53 }
 0x69d   :  { %v1894_v56 = vpop.f32.mrf.mxu0 }
 0x69f   :  { %v1520_v60 = vpop.f32.mrf.mxu0 }
 0x6a1   :  { %v1895_v57 = vpop.f32.mrf.mxu0 }
 0x6a2   :  { %v1538_v4 = vpack.c.bf16 %v1895_v57, %v1894_v56 }
 0x6a3   :  { %v1523_v5 = vpop.f32.mrf.mxu0 }
 0x6a4   :  { %v1537_v61 = vpack.c.bf16 %v1523_v5, %v1520_v60  ;;  %1896 = vmatprep.subr.bf16.mxu1 %v1538_v4 }
 0x6a5   :  { %1897 = vmatpush3.bf16.msra.mxu1 %v1538_v4 }
 0x6a6   :  { %1898 = vmatprep.subr.bf16.mxu1 %v1537_v61 }
 0x6a9   :  { %1899 = vmatpush3.bf16.msra.mxu1 %v1537_v61 }
 0x6aa   :  { %1900 = vmatprep.subr.bf16.mxu1 %v1536_v9 }
 0x6ad   :  { %1901 = vmatpush3.bf16.msra.mxu1 %v1536_v9 }
 0x6ae   :  { %1902 = vmatprep.subr.bf16.mxu1 %v1535_v10 }
 0x6b1   :  { %1903 = vmatpush3.bf16.msra.mxu1 %v1535_v10 }
 0x6b4   :  { %1905 = vmatmul.mubr.msk.bf16.vlgmr.msra.gmra.mxu1 %vm112_vm0, %v2233_v14 }
 0x6b5   :  { %1908 = vmatprep.mubr.msk.bf16.mxu1 %vm112_vm0, %v2238_v15 }
 0x6bc   :  { %1909 = vmatmul.mubr.msk.bf16.gmra.mxu1 %vm112_vm0, %v2250_v17 }
 0x774   :  { %v1906_v45 = vpop.f32.mrf.mxu1 }
 0x775   :  { %v1587_v46 = vadd.f32 %v1906_v45, %v1757_v42 }
 0x776   :  { %v1578_v47 = vpop.f32.mrf.mxu1 }
 0x777   :  { %1611 = vst [vmem:[%s2606_s7 + $0x10] sm:$0xff] %v1587_v46  ;;  %v1579_v52 = vadd.f32 %v1757_v42, %v1578_v47 }
 0x778   :  { %v1907_v50 = vpop.f32.mrf.mxu1 }
 0x779   :  { %1609 = vst [vmem:[%s2606_s7] sm:$0xff] %v1579_v52  ;;  %v1590_v14 = vadd.f32 %v1907_v50, %v1757_v42 }
 0x77a   :  { %v1581_v51 = vpop.f32.mrf.mxu1 }
 0x77b   :  { %1612 = vst [vmem:[%s2606_s7 + $0x18] sm:$0xff] %v1590_v14  ;;  %v1582_v15 = vadd.f32 %v1757_v42, %v1581_v51 }
 0x77c   :  { %v1910_v17 = vpop.f32.mrf.mxu1 }
 0x77d   :  { %1610 = vst [vmem:[%s2606_s7 + $0x8] sm:$0xff] %v1582_v15  ;;  %v1603_v54 = vadd.f32 %v1910_v17, %v1757_v42 }
 0x77e   :  { %v1594_v55 = vpop.f32.mrf.mxu1 }
 0x77f   :  { %1615 = vst [vmem:[%s2606_s7 + $0x30] sm:$0xff] %v1603_v54  ;;  %v1595_v62 = vadd.f32 %v1757_v42, %v1594_v55 }
 0x780   :  { %v1911_v63 = vpop.f32.mrf.mxu1 }
 0x781   :  { %1613 = vst [vmem:[%s2606_s7 + $0x20] sm:$0xff] %v1595_v62  ;;  %v1606_v2 = vadd.f32 %v1911_v63, %v1757_v42 }
 0x782   :  { %v1597_v3 = vpop.f32.mrf.mxu1 }
 0x783   :  { %1616 = vst [vmem:[%s2606_s7 + $0x38] sm:$0xff] %v1606_v2  ;;  %v1598_v20 = vadd.f32 %v1757_v42, %v1597_v3 }
 0x785   :  { %1614 = vst [vmem:[%s2606_s7 + $0x28] sm:$0xff] %v1598_v20 }
 0x786   :  { %1621 = vsyncpa [#allocation6], 1 }
 0x787   :  { %1622 = vsyncpa [#allocation8], 1 }
 0x788   :  { %1623 = vsyncmov [#allocation4] }
 0x78b   :  { %s1624_s1 = vpop.sfrf %1623 }
 0x78c   :  { %p1762_p6 = scmp.ne.s32.totalorder %s1624_s1, 0 }
 0x78e   :  { %1628 = shalt.err (%p1762_p6)  }
 0x78f   :  { %1630 = vsyncmov [#allocation4 + $0x1] }
 0x792   :  { %s1631_s21 = vpop.sfrf %1630 }
 0x793   :  { %p1763_p7 = scmp.ne.s32.totalorder %s1631_s21, 0 }
 0x795   :  { %1635 = shalt.err (%p1763_p7)  }

</bundles_post_ra>
